<compile_context>
chip_gen: v7x
topology: tpu7x:2x2x1
jax: 0.10.0
libtpu: 0.0.40
codegen_flags: <defaults>
</compile_context>

<pallas_src>
import functools

import jax
import jax.numpy as jnp
from jax.experimental import pallas as pl
from jax.experimental.pallas import tpu as pltpu


def _round_up(n: int, m: int) -> int:
    return ((n + m - 1) // m) * m


# ----------------------------------------------------------------------------
# Fused kernel: all three MLP heads in one pass, batch on lanes.
# ----------------------------------------------------------------------------
def _fused_kernel_factory(n_ks: int, n_t: int, n_r_hidden: int):
    n_r = n_r_hidden + 2  # hidden layers + (location, scale) heads

    def _dense_T(h, w, b):
        # h: (in, bm)   w: (out, in)   b: (out, 1) or None   ->  (out, bm)
        in_f = w.shape[1]
        if in_f <= 2:
            # outer-product-shaped layer: do it on the VPU, not the MXU
            y = w[:, 0:1] * h[0:1, :]
            for k in range(1, in_f):
                y = y + w[:, k:k + 1] * h[k:k + 1, :]
        else:
            y = jnp.dot(w, h, preferred_element_type=jnp.float32)
        if b is not None:
            y = y + b
        return y

    def kernel(*refs):
        xT_ref = refs[0]                       # (2, bm)  rows = [x[:,0], x[:,1]]
        o_l, o_t, o_rl, o_rs = refs[-4:]       # each (1, bm)
        p = refs[1:-4]

        i = 0
        ks_w = p[i:i + n_ks]; i += n_ks
        t_w = p[i:i + n_t];   i += n_t
        t_b = p[i:i + n_t];   i += n_t
        r_w = p[i:i + n_r];   i += n_r
        r_b = p[i:i + n_r];   i += n_r

        bm = o_l.shape[-1]

        # ---- ks head (root, no bias): constant ones input -> batch-independent
        #      scalar; compute once per tile, broadcast along lanes.
        hk = jnp.ones((1, 1), jnp.float32)
        for li in range(n_ks - 1):
            hk = jnp.tanh(_dense_T(hk, ks_w[li][...], None))          # NLA
        l_scalar = jax.nn.sigmoid(_dense_T(hk, ks_w[-1][...], None))  # (1, 1)
        o_l[...] = jnp.broadcast_to(l_scalar, (1, bm))

        # ---- t head: BernoulliMLP on x[:, 0]
        ht = xT_ref[0:1, :]                                           # (1, bm)
        for li in range(n_t - 1):
            ht = jnp.tanh(_dense_T(ht, t_w[li][...], t_b[li][...]))   # NLA
        o_t[...] = jax.nn.sigmoid(_dense_T(ht, t_w[-1][...], t_b[-1][...]))

        # ---- r head: LocationScaleMLP on x[:, 0:2] (linear heads, no sigmoid)
        hr = xT_ref[...]                                              # (2, bm)
        for li in range(n_r_hidden):
            hr = jnp.tanh(_dense_T(hr, r_w[li][...], r_b[li][...]))   # NLA
        o_rl[...] = _dense_T(hr, r_w[n_r_hidden][...], r_b[n_r_hidden][...])
        o_rs[...] = _dense_T(hr, r_w[n_r_hidden + 1][...], r_b[n_r_hidden + 1][...])

    return kernel


# ----------------------------------------------------------------------------
# Wrapper: build grid / BlockSpecs and invoke the fused kernel.
# ----------------------------------------------------------------------------
@functools.partial(jax.jit, static_argnames=("block_m",))
def _forward_impl(x, ks_w, t_w, t_b, r_w, r_b, *, block_m=1024):
    B = x.shape[0]
    # batch on lanes: (2, B) slab with rows [x[:,0], x[:,1]]
    xT = x[:, :2].astype(jnp.float32).T

    # Lane tile: big enough to amortize per-step overhead, >= 2 grid steps for
    # large B so v7x megacore ('parallel') can use both TensorCores.
    if B <= 256:
        bm = B
    else:
        bm = min(block_m, _round_up(pl.cdiv(B, 2), 128))
    grid = (pl.cdiv(B, bm),)

    n_ks, n_t, n_r_hidden = len(ks_w), len(t_w), len(r_w) - 2

    args = [xT, *ks_w, *t_w, *t_b, *r_w, *r_b]
    in_specs = [pl.BlockSpec((2, bm), lambda i: (0, i))]
    in_specs += [pl.BlockSpec(a.shape, lambda i: (0, 0)) for a in args[1:]]

    out_shape = tuple(jax.ShapeDtypeStruct((1, B), jnp.float32) for _ in range(4))
    out_specs = tuple(pl.BlockSpec((1, bm), lambda i: (0, i)) for _ in range(4))

    # Advisory cost estimate (per-row flops/transcendentals for the batched heads).
    flops = 0
    trans = 1  # sigmoid(t)
    for w in t_w:
        flops += 2 * w.shape[0] * w.shape[1]
    for w in t_w[:-1]:
        trans += w.shape[0]
    for w in r_w:
        flops += 2 * w.shape[0] * w.shape[1]
    for w in r_w[:-2]:
        trans += w.shape[0]
    param_bytes = sum(int(a.size) * 4 for a in args[1:])
    cost = pl.CostEstimate(
        flops=int(flops) * B,
        transcendentals=int(trans) * B,
        bytes_accessed=int(2 * B * 4 + 4 * B * 4 + param_bytes),
    )

    l_row, t_row, rl_row, rs_row = pl.pallas_call(
        _fused_kernel_factory(n_ks, n_t, n_r_hidden),
        out_shape=out_shape,
        grid=grid,
        in_specs=in_specs,
        out_specs=out_specs,
        compiler_params=pltpu.CompilerParams(dimension_semantics=("parallel",)),
        cost_estimate=cost,
    )(*args)

    # (1, B) lane-dense rows -> (B, 1) columns (reshape, not transpose)
    l_p = l_row[0][:, None]
    t_p = t_row[0][:, None]
    r_l = rl_row[0][:, None]
    r_s = rs_row[0][:, None]
    return l_p, t_p, r_l, r_s


def continuous_outcome_forward(x, params, *, block_m=1024):
    return _forward_impl(
        x,
        tuple(params["ks_w"]),
        tuple(params["t_w"]), tuple(params["t_b"]),
        tuple(params["r_w"]), tuple(params["r_b"]),
        block_m=block_m,
    )


# ----------------------------------------------------------------------------
# Parameter construction (deterministic, synthetic).  PyTorch layout:
# weight (out, in), bias stored as (out, 1).
# ----------------------------------------------------------------------------
def _init_mlp_params(key, dims, with_bias, n_out_heads=1):
    """dims: intermediate-layer chain, e.g. [1, 32, 32, 1]; then append
    n_out_heads output Linear(dims[-1], 1) heads."""
    shapes = [(dims[i + 1], dims[i]) for i in range(len(dims) - 1)]
    shapes += [(1, dims[-1])] * n_out_heads
    weights, biases = [], ([] if with_bias else None)
    for (dout, din) in shapes:
        key, kw, kb = jax.random.split(key, 3)
        scale = 1.0 / jnp.sqrt(jnp.float32(din))
        weights.append(scale * jax.random.normal(kw, (dout, din), jnp.float32))
        if with_bias:
            biases.append(scale * jax.random.normal(kb, (dout, 1), jnp.float32))
    return weights, biases


def make_continuous_outcome_params(key, arch):
    """Mirrors ContinuousOutcome.__init__: ARCH = arch + [1];
    ks: BernoulliMLP([1]+ARCH, root=True)  (no bias),
    t : BernoulliMLP([1]+ARCH)             (bias),
    r : LocationScaleMLP([2]+ARCH)         (bias, two output heads)."""
    ARCH = list(arch) + [1]
    k_ks, k_t, k_r = jax.random.split(key, 3)
    ks_w, _ = _init_mlp_params(k_ks, [1] + ARCH, with_bias=False, n_out_heads=1)
    t_w, t_b = _init_mlp_params(k_t, [1] + ARCH, with_bias=True, n_out_heads=1)
    r_w, r_b = _init_mlp_params(k_r, [2] + ARCH, with_bias=True, n_out_heads=2)
    return {"ks_w": ks_w, "t_w": t_w, "t_b": t_b, "r_w": r_w, "r_b": r_b}


# ----------------------------------------------------------------------------
# Pure-JAX reference (sanity check only).
# ----------------------------------------------------------------------------
def _ref_hidden(x, weights, biases, n_hidden):
    hp = jax.lax.Precision.HIGHEST
    for i in range(n_hidden):
        x = jnp.dot(x, weights[i].T, precision=hp)
        if biases is not None:
            x = x + biases[i].T
        x = jnp.tanh(x)
    return x


def _ref_continuous_outcome(x, params):
    hp = jax.lax.Precision.HIGHEST
    B = x.shape[0]
    ks_w = params["ks_w"]
    t_w, t_b = params["t_w"], params["t_b"]
    r_w, r_b = params["r_w"], params["r_b"]

    const = jnp.ones((B, 1), jnp.float32)
    h = _ref_hidden(const, ks_w, None, len(ks_w) - 1)
    l_p = jax.nn.sigmoid(jnp.dot(h, ks_w[-1].T, precision=hp))

    h = _ref_hidden(x[:, 0:1], t_w, t_b, len(t_w) - 1)
    t_p = jax.nn.sigmoid(jnp.dot(h, t_w[-1].T, precision=hp) + t_b[-1].T)

    nrh = len(r_w) - 2
    h = _ref_hidden(x[:, 0:2], r_w, r_b, nrh)
    r_l = jnp.dot(h, r_w[nrh].T, precision=hp) + r_b[nrh].T
    r_s = jnp.dot(h, r_w[nrh + 1].T, precision=hp) + r_b[nrh + 1].T
    return l_p, t_p, r_l, r_s


if __name__ == "__main__":
    key = jax.random.PRNGKey(0)
    k_param, k_x = jax.random.split(key)

    B = 8            # batch
    D = 4            # input features (forward uses columns 0 and 1)
    ARCH = [32, 32]  # hidden widths before the appended [1]

    params = make_continuous_outcome_params(k_param, ARCH)
    x = jax.random.normal(k_x, (B, D), jnp.float32)

    l_p, t_p, r_l, r_s = continuous_outcome_forward(x, params)
    jax.block_until_ready((l_p, t_p, r_l, r_s))

    # sanity check against a plain-JAX reference
    l_r, t_r, rl_r, rs_r = _ref_continuous_outcome(x, params)
    assert l_p.shape == (B, 1) and t_p.shape == (B, 1)
    assert r_l.shape == (B, 1) and r_s.shape == (B, 1)
    assert jnp.allclose(l_p, l_r, atol=1e-3, rtol=1e-3)
    assert jnp.allclose(t_p, t_r, atol=1e-3, rtol=1e-3)
    assert jnp.allclose(r_l, rl_r, atol=1e-3, rtol=1e-3)
    assert jnp.allclose(r_s, rs_r, atol=1e-3, rtol=1e-3)

    print("KERNEL_OK")
</pallas_src>

<mosaic_0001>
module attributes {stable_mosaic.version = 11 : i64} {
  func.func @kernel(%arg0: i32, %arg1: memref<2x8xf32, #tpu.memory_space<vmem>>, %arg2: memref<32x1xf32, #tpu.memory_space<vmem>>, %arg3: memref<32x32xf32, #tpu.memory_space<vmem>>, %arg4: memref<1x32xf32, #tpu.memory_space<vmem>>, %arg5: memref<1x1xf32, #tpu.memory_space<vmem>>, %arg6: memref<32x1xf32, #tpu.memory_space<vmem>>, %arg7: memref<32x32xf32, #tpu.memory_space<vmem>>, %arg8: memref<1x32xf32, #tpu.memory_space<vmem>>, %arg9: memref<1x1xf32, #tpu.memory_space<vmem>>, %arg10: memref<32x1xf32, #tpu.memory_space<vmem>>, %arg11: memref<32x1xf32, #tpu.memory_space<vmem>>, %arg12: memref<1x1xf32, #tpu.memory_space<vmem>>, %arg13: memref<1x1xf32, #tpu.memory_space<vmem>>, %arg14: memref<32x2xf32, #tpu.memory_space<vmem>>, %arg15: memref<32x32xf32, #tpu.memory_space<vmem>>, %arg16: memref<1x32xf32, #tpu.memory_space<vmem>>, %arg17: memref<1x1xf32, #tpu.memory_space<vmem>>, %arg18: memref<1x1xf32, #tpu.memory_space<vmem>>, %arg19: memref<32x1xf32, #tpu.memory_space<vmem>>, %arg20: memref<32x1xf32, #tpu.memory_space<vmem>>, %arg21: memref<1x1xf32, #tpu.memory_space<vmem>>, %arg22: memref<1x1xf32, #tpu.memory_space<vmem>>, %arg23: memref<1x1xf32, #tpu.memory_space<vmem>>, %arg24: memref<1x8xf32, #tpu.memory_space<vmem>>, %arg25: memref<1x8xf32, #tpu.memory_space<vmem>>, %arg26: memref<1x8xf32, #tpu.memory_space<vmem>>, %arg27: memref<1x8xf32, #tpu.memory_space<vmem>>) attributes {dimension_semantics = [#tpu.dimension_semantics<parallel>], iteration_bounds = array<i64: 1>, scalar_prefetch = 0 : i64, scratch_operands = 0 : i64, tpu.core_type = #tpu.core_type<tc>, window_params = [{transform_indices = @transform_0, window_bounds = array<i64: 2, 8>}, {pipeline_mode = #tpu.pipeline_mode<synchronous>, transform_indices = @transform_1, window_bounds = array<i64: 32, 1>}, {pipeline_mode = #tpu.pipeline_mode<synchronous>, transform_indices = @transform_2, window_bounds = array<i64: 32, 32>}, {pipeline_mode = #tpu.pipeline_mode<synchronous>, transform_indices = @transform_3, window_bounds = array<i64: 1, 32>}, {pipeline_mode = #tpu.pipeline_mode<synchronous>, transform_indices = @transform_4, window_bounds = array<i64: 1, 1>}, {pipeline_mode = #tpu.pipeline_mode<synchronous>, transform_indices = @transform_5, window_bounds = array<i64: 32, 1>}, {pipeline_mode = #tpu.pipeline_mode<synchronous>, transform_indices = @transform_6, window_bounds = array<i64: 32, 32>}, {pipeline_mode = #tpu.pipeline_mode<synchronous>, transform_indices = @transform_7, window_bounds = array<i64: 1, 32>}, {pipeline_mode = #tpu.pipeline_mode<synchronous>, transform_indices = @transform_8, window_bounds = array<i64: 1, 1>}, {pipeline_mode = #tpu.pipeline_mode<synchronous>, transform_indices = @transform_9, window_bounds = array<i64: 32, 1>}, {pipeline_mode = #tpu.pipeline_mode<synchronous>, transform_indices = @transform_10, window_bounds = array<i64: 32, 1>}, {pipeline_mode = #tpu.pipeline_mode<synchronous>, transform_indices = @transform_11, window_bounds = array<i64: 1, 1>}, {pipeline_mode = #tpu.pipeline_mode<synchronous>, transform_indices = @transform_12, window_bounds = array<i64: 1, 1>}, {pipeline_mode = #tpu.pipeline_mode<synchronous>, transform_indices = @transform_13, window_bounds = array<i64: 32, 2>}, {pipeline_mode = #tpu.pipeline_mode<synchronous>, transform_indices = @transform_14, window_bounds = array<i64: 32, 32>}, {pipeline_mode = #tpu.pipeline_mode<synchronous>, transform_indices = @transform_15, window_bounds = array<i64: 1, 32>}, {pipeline_mode = #tpu.pipeline_mode<synchronous>, transform_indices = @transform_16, window_bounds = array<i64: 1, 1>}, {pipeline_mode = #tpu.pipeline_mode<synchronous>, transform_indices = @transform_17, window_bounds = array<i64: 1, 1>}, {pipeline_mode = #tpu.pipeline_mode<synchronous>, transform_indices = @transform_18, window_bounds = array<i64: 32, 1>}, {pipeline_mode = #tpu.pipeline_mode<synchronous>, transform_indices = @transform_19, window_bounds = array<i64: 32, 1>}, {pipeline_mode = #tpu.pipeline_mode<synchronous>, transform_indices = @transform_20, window_bounds = array<i64: 1, 1>}, {pipeline_mode = #tpu.pipeline_mode<synchronous>, transform_indices = @transform_21, window_bounds = array<i64: 1, 1>}, {pipeline_mode = #tpu.pipeline_mode<synchronous>, transform_indices = @transform_22, window_bounds = array<i64: 1, 1>}, {transform_indices = @transform_23, window_bounds = array<i64: 1, 8>}, {transform_indices = @transform_24, window_bounds = array<i64: 1, 8>}, {transform_indices = @transform_25, window_bounds = array<i64: 1, 8>}, {transform_indices = @transform_26, window_bounds = array<i64: 1, 8>}]} {
    %cst = arith.constant 1.000000e+00 : f32
    %0 = vector.broadcast %cst : f32 to vector<1x1xf32>
    %c0 = arith.constant 0 : index
    %c0_0 = arith.constant 0 : index
    %1 = vector.load %arg2[%c0, %c0_0] : memref<32x1xf32, #tpu.memory_space<vmem>>, vector<32x1xf32>
    %2 = vector.broadcast %0 : vector<1x1xf32> to vector<32x1xf32>
    %3 = arith.mulf %1, %2 : vector<32x1xf32>
    %4 = math.tanh %3 : vector<32x1xf32>
    %c0_1 = arith.constant 0 : index
    %c0_2 = arith.constant 0 : index
    %5 = vector.load %arg3[%c0_1, %c0_2] : memref<32x32xf32, #tpu.memory_space<vmem>>, vector<32x32xf32>
    %cst_3 = arith.constant dense<0.000000e+00> : vector<32x1xf32>
    %6 = tpu.matmul %5, %4, %cst_3 {dimension_numbers = #tpu.dot_dimension_numbers<[1], [0], [0], [1], [0, 0, 1, 1], [], []>} : vector<32x32xf32>, vector<32x1xf32>, vector<32x1xf32> -> vector<32x1xf32>
    %7 = math.tanh %6 : vector<32x1xf32>
    %c0_4 = arith.constant 0 : index
    %c0_5 = arith.constant 0 : index
    %8 = vector.load %arg4[%c0_4, %c0_5] : memref<1x32xf32, #tpu.memory_space<vmem>>, vector<1x32xf32>
    %cst_6 = arith.constant dense<0.000000e+00> : vector<1x1xf32>
    %9 = tpu.matmul %8, %7, %cst_6 {dimension_numbers = #tpu.dot_dimension_numbers<[1], [0], [0], [1], [0, 0, 1, 1], [], []>} : vector<1x32xf32>, vector<32x1xf32>, vector<1x1xf32> -> vector<1x1xf32>
    %10 = math.tanh %9 : vector<1x1xf32>
    %c0_7 = arith.constant 0 : index
    %c0_8 = arith.constant 0 : index
    %11 = vector.load %arg5[%c0_7, %c0_8] : memref<1x1xf32, #tpu.memory_space<vmem>>, vector<1x1xf32>
    %12 = arith.mulf %11, %10 : vector<1x1xf32>
    %13 = arith.negf %12 : vector<1x1xf32>
    %14 = math.exp %13 : vector<1x1xf32>
    %cst_9 = arith.constant 1.000000e+00 : f32
    %15 = vector.broadcast %cst_9 : f32 to vector<1x1xf32>
    %16 = arith.addf %15, %14 : vector<1x1xf32>
    %17 = arith.divf %15, %16 : vector<1x1xf32>
    %18 = vector.shape_cast %17 : vector<1x1xf32> to vector<1x1xf32>
    %19 = vector.broadcast %18 : vector<1x1xf32> to vector<1x8xf32>
    %c0_10 = arith.constant 0 : index
    %c0_11 = arith.constant 0 : index
    %20 = vector.load %arg24[%c0_10, %c0_11] : memref<1x8xf32, #tpu.memory_space<vmem>>, vector<1x8xf32>
    tpu.vector_store %arg24[%c0_10, %c0_11], %19 {strides = array<i32>} : memref<1x8xf32, #tpu.memory_space<vmem>>, vector<1x8xf32>,
    %c0_12 = arith.constant 0 : index
    %c0_13 = arith.constant 0 : index
    %21 = vector.load %arg1[%c0_12, %c0_13] : memref<2x8xf32, #tpu.memory_space<vmem>>, vector<1x8xf32>
    %c0_14 = arith.constant 0 : index
    %c0_15 = arith.constant 0 : index
    %22 = vector.load %arg6[%c0_14, %c0_15] : memref<32x1xf32, #tpu.memory_space<vmem>>, vector<32x1xf32>
    %c0_16 = arith.constant 0 : index
    %c0_17 = arith.constant 0 : index
    %23 = vector.load %arg10[%c0_16, %c0_17] : memref<32x1xf32, #tpu.memory_space<vmem>>, vector<32x1xf32>
    %24 = vector.broadcast %22 : vector<32x1xf32> to vector<32x8xf32>
    %25 = vector.broadcast %21 : vector<1x8xf32> to vector<32x8xf32>
    %26 = arith.mulf %24, %25 : vector<32x8xf32>
    %27 = vector.broadcast %23 : vector<32x1xf32> to vector<32x8xf32>
    %28 = arith.addf %26, %27 : vector<32x8xf32>
    %29 = math.tanh %28 : vector<32x8xf32>
    %c0_18 = arith.constant 0 : index
    %c0_19 = arith.constant 0 : index
    %30 = vector.load %arg7[%c0_18, %c0_19] : memref<32x32xf32, #tpu.memory_space<vmem>>, vector<32x32xf32>
    %c0_20 = arith.constant 0 : index
    %c0_21 = arith.constant 0 : index
    %31 = vector.load %arg11[%c0_20, %c0_21] : memref<32x1xf32, #tpu.memory_space<vmem>>, vector<32x1xf32>
    %cst_22 = arith.constant dense<0.000000e+00> : vector<32x8xf32>
    %32 = tpu.matmul %30, %29, %cst_22 {dimension_numbers = #tpu.dot_dimension_numbers<[1], [0], [0], [1], [0, 0, 1, 1], [], []>} : vector<32x32xf32>, vector<32x8xf32>, vector<32x8xf32> -> vector<32x8xf32>
    %33 = vector.broadcast %31 : vector<32x1xf32> to vector<32x8xf32>
    %34 = arith.addf %32, %33 : vector<32x8xf32>
    %35 = math.tanh %34 : vector<32x8xf32>
    %c0_23 = arith.constant 0 : index
    %c0_24 = arith.constant 0 : index
    %36 = vector.load %arg8[%c0_23, %c0_24] : memref<1x32xf32, #tpu.memory_space<vmem>>, vector<1x32xf32>
    %c0_25 = arith.constant 0 : index
    %c0_26 = arith.constant 0 : index
    %37 = vector.load %arg12[%c0_25, %c0_26] : memref<1x1xf32, #tpu.memory_space<vmem>>, vector<1x1xf32>
    %cst_27 = arith.constant dense<0.000000e+00> : vector<1x8xf32>
    %38 = tpu.matmul %36, %35, %cst_27 {dimension_numbers = #tpu.dot_dimension_numbers<[1], [0], [0], [1], [0, 0, 1, 1], [], []>} : vector<1x32xf32>, vector<32x8xf32>, vector<1x8xf32> -> vector<1x8xf32>
    %39 = vector.broadcast %37 : vector<1x1xf32> to vector<1x8xf32>
    %40 = arith.addf %38, %39 : vector<1x8xf32>
    %41 = math.tanh %40 : vector<1x8xf32>
    %c0_28 = arith.constant 0 : index
    %c0_29 = arith.constant 0 : index
    %42 = vector.load %arg9[%c0_28, %c0_29] : memref<1x1xf32, #tpu.memory_space<vmem>>, vector<1x1xf32>
    %c0_30 = arith.constant 0 : index
    %c0_31 = arith.constant 0 : index
    %43 = vector.load %arg13[%c0_30, %c0_31] : memref<1x1xf32, #tpu.memory_space<vmem>>, vector<1x1xf32>
    %44 = vector.broadcast %42 : vector<1x1xf32> to vector<1x8xf32>
    %45 = arith.mulf %44, %41 : vector<1x8xf32>
    %46 = vector.broadcast %43 : vector<1x1xf32> to vector<1x8xf32>
    %47 = arith.addf %45, %46 : vector<1x8xf32>
    %48 = arith.negf %47 : vector<1x8xf32>
    %49 = math.exp %48 : vector<1x8xf32>
    %cst_32 = arith.constant 1.000000e+00 : f32
    %50 = vector.broadcast %cst_32 : f32 to vector<1x8xf32>
    %51 = arith.addf %50, %49 : vector<1x8xf32>
    %52 = arith.divf %50, %51 : vector<1x8xf32>
    %c0_33 = arith.constant 0 : index
    %c0_34 = arith.constant 0 : index
    %53 = vector.load %arg25[%c0_33, %c0_34] : memref<1x8xf32, #tpu.memory_space<vmem>>, vector<1x8xf32>
    tpu.vector_store %arg25[%c0_33, %c0_34], %52 {strides = array<i32>} : memref<1x8xf32, #tpu.memory_space<vmem>>, vector<1x8xf32>,
    %c0_35 = arith.constant 0 : index
    %c0_36 = arith.constant 0 : index
    %54 = vector.load %arg1[%c0_35, %c0_36] : memref<2x8xf32, #tpu.memory_space<vmem>>, vector<2x8xf32>
    %c0_37 = arith.constant 0 : index
    %c0_38 = arith.constant 0 : index
    %55 = vector.load %arg14[%c0_37, %c0_38] : memref<32x2xf32, #tpu.memory_space<vmem>>, vector<32x2xf32>
    %c0_39 = arith.constant 0 : index
    %c0_40 = arith.constant 0 : index
    %56 = vector.load %arg19[%c0_39, %c0_40] : memref<32x1xf32, #tpu.memory_space<vmem>>, vector<32x1xf32>
    %57 = vector.extract_strided_slice %55 {offsets = [0, 0], sizes = [32, 1], strides = [1, 1]} : vector<32x2xf32> to vector<32x1xf32>
    %58 = vector.extract_strided_slice %54 {offsets = [0, 0], sizes = [1, 8], strides = [1, 1]} : vector<2x8xf32> to vector<1x8xf32>
    %59 = vector.broadcast %57 : vector<32x1xf32> to vector<32x8xf32>
    %60 = vector.broadcast %58 : vector<1x8xf32> to vector<32x8xf32>
    %61 = arith.mulf %59, %60 : vector<32x8xf32>
    %62 = vector.extract_strided_slice %55 {offsets = [0, 1], sizes = [32, 1], strides = [1, 1]} : vector<32x2xf32> to vector<32x1xf32>
    %63 = vector.extract_strided_slice %54 {offsets = [1, 0], sizes = [1, 8], strides = [1, 1]} : vector<2x8xf32> to vector<1x8xf32>
    %64 = vector.broadcast %62 : vector<32x1xf32> to vector<32x8xf32>
    %65 = vector.broadcast %63 : vector<1x8xf32> to vector<32x8xf32>
    %66 = arith.mulf %64, %65 : vector<32x8xf32>
    %67 = arith.addf %61, %66 : vector<32x8xf32>
    %68 = vector.broadcast %56 : vector<32x1xf32> to vector<32x8xf32>
    %69 = arith.addf %67, %68 : vector<32x8xf32>
    %70 = math.tanh %69 : vector<32x8xf32>
    %c0_41 = arith.constant 0 : index
    %c0_42 = arith.constant 0 : index
    %71 = vector.load %arg15[%c0_41, %c0_42] : memref<32x32xf32, #tpu.memory_space<vmem>>, vector<32x32xf32>
    %c0_43 = arith.constant 0 : index
    %c0_44 = arith.constant 0 : index
    %72 = vector.load %arg20[%c0_43, %c0_44] : memref<32x1xf32, #tpu.memory_space<vmem>>, vector<32x1xf32>
    %cst_45 = arith.constant dense<0.000000e+00> : vector<32x8xf32>
    %73 = tpu.matmul %71, %70, %cst_45 {dimension_numbers = #tpu.dot_dimension_numbers<[1], [0], [0], [1], [0, 0, 1, 1], [], []>} : vector<32x32xf32>, vector<32x8xf32>, vector<32x8xf32> -> vector<32x8xf32>
    %74 = vector.broadcast %72 : vector<32x1xf32> to vector<32x8xf32>
    %75 = arith.addf %73, %74 : vector<32x8xf32>
    %76 = math.tanh %75 : vector<32x8xf32>
    %c0_46 = arith.constant 0 : index
    %c0_47 = arith.constant 0 : index
    %77 = vector.load %arg16[%c0_46, %c0_47] : memref<1x32xf32, #tpu.memory_space<vmem>>, vector<1x32xf32>
    %c0_48 = arith.constant 0 : index
    %c0_49 = arith.constant 0 : index
    %78 = vector.load %arg21[%c0_48, %c0_49] : memref<1x1xf32, #tpu.memory_space<vmem>>, vector<1x1xf32>
    %cst_50 = arith.constant dense<0.000000e+00> : vector<1x8xf32>
    %79 = tpu.matmul %77, %76, %cst_50 {dimension_numbers = #tpu.dot_dimension_numbers<[1], [0], [0], [1], [0, 0, 1, 1], [], []>} : vector<1x32xf32>, vector<32x8xf32>, vector<1x8xf32> -> vector<1x8xf32>
    %80 = vector.broadcast %78 : vector<1x1xf32> to vector<1x8xf32>
    %81 = arith.addf %79, %80 : vector<1x8xf32>
    %82 = math.tanh %81 : vector<1x8xf32>
    %c0_51 = arith.constant 0 : index
    %c0_52 = arith.constant 0 : index
    %83 = vector.load %arg17[%c0_51, %c0_52] : memref<1x1xf32, #tpu.memory_space<vmem>>, vector<1x1xf32>
    %c0_53 = arith.constant 0 : index
    %c0_54 = arith.constant 0 : index
    %84 = vector.load %arg22[%c0_53, %c0_54] : memref<1x1xf32, #tpu.memory_space<vmem>>, vector<1x1xf32>
    %85 = vector.broadcast %83 : vector<1x1xf32> to vector<1x8xf32>
    %86 = arith.mulf %85, %82 : vector<1x8xf32>
    %87 = vector.broadcast %84 : vector<1x1xf32> to vector<1x8xf32>
    %88 = arith.addf %86, %87 : vector<1x8xf32>
    %c0_55 = arith.constant 0 : index
    %c0_56 = arith.constant 0 : index
    %89 = vector.load %arg26[%c0_55, %c0_56] : memref<1x8xf32, #tpu.memory_space<vmem>>, vector<1x8xf32>
    tpu.vector_store %arg26[%c0_55, %c0_56], %88 {strides = array<i32>} : memref<1x8xf32, #tpu.memory_space<vmem>>, vector<1x8xf32>,
    %c0_57 = arith.constant 0 : index
    %c0_58 = arith.constant 0 : index
    %90 = vector.load %arg18[%c0_57, %c0_58] : memref<1x1xf32, #tpu.memory_space<vmem>>, vector<1x1xf32>
    %c0_59 = arith.constant 0 : index
    %c0_60 = arith.constant 0 : index
    %91 = vector.load %arg23[%c0_59, %c0_60] : memref<1x1xf32, #tpu.memory_space<vmem>>, vector<1x1xf32>
    %92 = vector.broadcast %90 : vector<1x1xf32> to vector<1x8xf32>
    %93 = arith.mulf %92, %82 : vector<1x8xf32>
    %94 = vector.broadcast %91 : vector<1x1xf32> to vector<1x8xf32>
    %95 = arith.addf %93, %94 : vector<1x8xf32>
    %c0_61 = arith.constant 0 : index
    %c0_62 = arith.constant 0 : index
    %96 = vector.load %arg27[%c0_61, %c0_62] : memref<1x8xf32, #tpu.memory_space<vmem>>, vector<1x8xf32>
    tpu.vector_store %arg27[%c0_61, %c0_62], %95 {strides = array<i32>} : memref<1x8xf32, #tpu.memory_space<vmem>>, vector<1x8xf32>,
    return
  }
  func.func @transform_0(%arg0: i32) -> (i32, i32) {
    %c0_i32 = arith.constant 0 : i32
    %c0_i32_0 = arith.constant 0 : i32
    return %c0_i32, %arg0 : i32, i32
  }
  func.func @transform_1(%arg0: i32) -> (i32, i32) {
    %c0_i32 = arith.constant 0 : i32
    %c0_i32_0 = arith.constant 0 : i32
    %c0_i32_1 = arith.constant 0 : i32
    return %c0_i32, %c0_i32_0 : i32, i32
  }
  func.func @transform_2(%arg0: i32) -> (i32, i32) {
    %c0_i32 = arith.constant 0 : i32
    %c0_i32_0 = arith.constant 0 : i32
    %c0_i32_1 = arith.constant 0 : i32
    return %c0_i32, %c0_i32_0 : i32, i32
  }
  func.func @transform_3(%arg0: i32) -> (i32, i32) {
    %c0_i32 = arith.constant 0 : i32
    %c0_i32_0 = arith.constant 0 : i32
    %c0_i32_1 = arith.constant 0 : i32
    return %c0_i32, %c0_i32_0 : i32, i32
  }
  func.func @transform_4(%arg0: i32) -> (i32, i32) {
    %c0_i32 = arith.constant 0 : i32
    %c0_i32_0 = arith.constant 0 : i32
    %c0_i32_1 = arith.constant 0 : i32
    return %c0_i32, %c0_i32_0 : i32, i32
  }
  func.func @transform_5(%arg0: i32) -> (i32, i32) {
    %c0_i32 = arith.constant 0 : i32
    %c0_i32_0 = arith.constant 0 : i32
    %c0_i32_1 = arith.constant 0 : i32
    return %c0_i32, %c0_i32_0 : i32, i32
  }
  func.func @transform_6(%arg0: i32) -> (i32, i32) {
    %c0_i32 = arith.constant 0 : i32
    %c0_i32_0 = arith.constant 0 : i32
    %c0_i32_1 = arith.constant 0 : i32
    return %c0_i32, %c0_i32_0 : i32, i32
  }
  func.func @transform_7(%arg0: i32) -> (i32, i32) {
    %c0_i32 = arith.constant 0 : i32
    %c0_i32_0 = arith.constant 0 : i32
    %c0_i32_1 = arith.constant 0 : i32
    return %c0_i32, %c0_i32_0 : i32, i32
  }
  func.func @transform_8(%arg0: i32) -> (i32, i32) {
    %c0_i32 = arith.constant 0 : i32
    %c0_i32_0 = arith.constant 0 : i32
    %c0_i32_1 = arith.constant 0 : i32
    return %c0_i32, %c0_i32_0 : i32, i32
  }
  func.func @transform_9(%arg0: i32) -> (i32, i32) {
    %c0_i32 = arith.constant 0 : i32
    %c0_i32_0 = arith.constant 0 : i32
    %c0_i32_1 = arith.constant 0 : i32
    return %c0_i32, %c0_i32_0 : i32, i32
  }
  func.func @transform_10(%arg0: i32) -> (i32, i32) {
    %c0_i32 = arith.constant 0 : i32
    %c0_i32_0 = arith.constant 0 : i32
    %c0_i32_1 = arith.constant 0 : i32
    return %c0_i32, %c0_i32_0 : i32, i32
  }
  func.func @transform_11(%arg0: i32) -> (i32, i32) {
    %c0_i32 = arith.constant 0 : i32
    %c0_i32_0 = arith.constant 0 : i32
    %c0_i32_1 = arith.constant 0 : i32
    return %c0_i32, %c0_i32_0 : i32, i32
  }
  func.func @transform_12(%arg0: i32) -> (i32, i32) {
    %c0_i32 = arith.constant 0 : i32
    %c0_i32_0 = arith.constant 0 : i32
    %c0_i32_1 = arith.constant 0 : i32
    return %c0_i32, %c0_i32_0 : i32, i32
  }
  func.func @transform_13(%arg0: i32) -> (i32, i32) {
    %c0_i32 = arith.constant 0 : i32
    %c0_i32_0 = arith.constant 0 : i32
    %c0_i32_1 = arith.constant 0 : i32
    return %c0_i32, %c0_i32_0 : i32, i32
  }
  func.func @transform_14(%arg0: i32) -> (i32, i32) {
    %c0_i32 = arith.constant 0 : i32
    %c0_i32_0 = arith.constant 0 : i32
    %c0_i32_1 = arith.constant 0 : i32
    return %c0_i32, %c0_i32_0 : i32, i32
  }
  func.func @transform_15(%arg0: i32) -> (i32, i32) {
    %c0_i32 = arith.constant 0 : i32
    %c0_i32_0 = arith.constant 0 : i32
    %c0_i32_1 = arith.constant 0 : i32
    return %c0_i32, %c0_i32_0 : i32, i32
  }
  func.func @transform_16(%arg0: i32) -> (i32, i32) {
    %c0_i32 = arith.constant 0 : i32
    %c0_i32_0 = arith.constant 0 : i32
    %c0_i32_1 = arith.constant 0 : i32
    return %c0_i32, %c0_i32_0 : i32, i32
  }
  func.func @transform_17(%arg0: i32) -> (i32, i32) {
    %c0_i32 = arith.constant 0 : i32
    %c0_i32_0 = arith.constant 0 : i32
    %c0_i32_1 = arith.constant 0 : i32
    return %c0_i32, %c0_i32_0 : i32, i32
  }
  func.func @transform_18(%arg0: i32) -> (i32, i32) {
    %c0_i32 = arith.constant 0 : i32
    %c0_i32_0 = arith.constant 0 : i32
    %c0_i32_1 = arith.constant 0 : i32
    return %c0_i32, %c0_i32_0 : i32, i32
  }
  func.func @transform_19(%arg0: i32) -> (i32, i32) {
    %c0_i32 = arith.constant 0 : i32
    %c0_i32_0 = arith.constant 0 : i32
    %c0_i32_1 = arith.constant 0 : i32
    return %c0_i32, %c0_i32_0 : i32, i32
  }
  func.func @transform_20(%arg0: i32) -> (i32, i32) {
    %c0_i32 = arith.constant 0 : i32
    %c0_i32_0 = arith.constant 0 : i32
    %c0_i32_1 = arith.constant 0 : i32
    return %c0_i32, %c0_i32_0 : i32, i32
  }
  func.func @transform_21(%arg0: i32) -> (i32, i32) {
    %c0_i32 = arith.constant 0 : i32
    %c0_i32_0 = arith.constant 0 : i32
    %c0_i32_1 = arith.constant 0 : i32
    return %c0_i32, %c0_i32_0 : i32, i32
  }
  func.func @transform_22(%arg0: i32) -> (i32, i32) {
    %c0_i32 = arith.constant 0 : i32
    %c0_i32_0 = arith.constant 0 : i32
    %c0_i32_1 = arith.constant 0 : i32
    return %c0_i32, %c0_i32_0 : i32, i32
  }
  func.func @transform_23(%arg0: i32) -> (i32, i32) {
    %c0_i32 = arith.constant 0 : i32
    %c0_i32_0 = arith.constant 0 : i32
    return %c0_i32, %arg0 : i32, i32
  }
  func.func @transform_24(%arg0: i32) -> (i32, i32) {
    %c0_i32 = arith.constant 0 : i32
    %c0_i32_0 = arith.constant 0 : i32
    return %c0_i32, %arg0 : i32, i32
  }
  func.func @transform_25(%arg0: i32) -> (i32, i32) {
    %c0_i32 = arith.constant 0 : i32
    %c0_i32_0 = arith.constant 0 : i32
    return %c0_i32, %arg0 : i32, i32
  }
  func.func @transform_26(%arg0: i32) -> (i32, i32) {
    %c0_i32 = arith.constant 0 : i32
    %c0_i32_0 = arith.constant 0 : i32
    return %c0_i32, %arg0 : i32, i32
  }
}

</mosaic_0001>

<bundles_post_ra>
// kernel: _forward_impl.1
= control target key start
LH: loop header
LB: loop body
LE: loop exit
PB: predicated region body
PF: predicated region fallthrough
CT: control target
= control target key end

     0   :  { %s1786_s0 = inlined_call_operand.vmem [shape: f32[2,8], index: 0, kind: input, shape index: {}]   ;;  %s1787_s1 = inlined_call_operand.vmem [shape: f32[32,1], index: 1, kind: input, shape index: {}]   ;;  %s1788_s2 = inlined_call_operand.vmem [shape: f32[32,32], index: 2, kind: input, shape index: {}]   ;;  %s1789_s3 = inlined_call_operand.vmem [shape: f32[1,32], index: 3, kind: input, shape index: {}]   ;;  %s1790_s4 = inlined_call_operand.<no memory space> [shape: f32[1,1], index: 4, kind: input, shape index: {}]   ;;  %s1791_s5 = inlined_call_operand.vmem [shape: f32[32,1], index: 5, kind: input, shape index: {}]   ;;  %s1792_s6 = inlined_call_operand.vmem [shape: f32[32,32], index: 6, kind: input, shape index: {}]   ;;  %s1793_s7 = inlined_call_operand.vmem [shape: f32[1,32], index: 7, kind: input, shape index: {}]   ;;  %s1794_s9 = inlined_call_operand.vmem [shape: f32[32,1], index: 9, kind: input, shape index: {}]   ;;  %s1795_s10 = inlined_call_operand.vmem [shape: f32[32,1], index: 10, kind: input, shape index: {}]   ;;  %s1796_s13 = inlined_call_operand.vmem [shape: f32[32,2], index: 13, kind: input, shape index: {}]   ;;  %s1797_s14 = inlined_call_operand.vmem [shape: f32[32,32], index: 14, kind: input, shape index: {}]   ;;  %s1798_s15 = inlined_call_operand.vmem [shape: f32[1,32], index: 15, kind: input, shape index: {}]   ;;  %s1799_s18 = inlined_call_operand.vmem [shape: f32[32,1], index: 18, kind: input, shape index: {}]   ;;  %s1800_s19 = inlined_call_operand.vmem [shape: f32[32,1], index: 19, kind: input, shape index: {}]   ;;  %s1801_s23 = inlined_call_operand.hbm [shape: f32[1,8], index: 23, kind: output, shape index: {0}]   ;;  %s1802_s24 = inlined_call_operand.hbm [shape: f32[1,8], index: 24, kind: output, shape index: {1}]   ;;  %s1803_s25 = inlined_call_operand.hbm [shape: f32[1,8], index: 25, kind: output, shape index: {2}]   ;;  %s1804_s26 = inlined_call_operand.hbm [shape: f32[1,8], index: 26, kind: output, shape index: {3}]   ;;  %s1805_s8 = inlined_call_operand.<no memory space> [shape: f32[1,1], index: 8, kind: input, shape index: {}]   ;;  %s1806_s11 = inlined_call_operand.<no memory space> [shape: f32[1,1], index: 11, kind: input, shape index: {}]   ;;  %s1807_s12 = inlined_call_operand.<no memory space> [shape: f32[1,1], index: 12, kind: input, shape index: {}]   ;;  %s1808_s16 = inlined_call_operand.<no memory space> [shape: f32[1,1], index: 16, kind: input, shape index: {}]   ;;  %s1809_s17 = inlined_call_operand.<no memory space> [shape: f32[1,1], index: 17, kind: input, shape index: {}]   ;;  %s1810_s20 = inlined_call_operand.<no memory space> [shape: f32[1,1], index: 20, kind: input, shape index: {}]   ;;  %s1811_s21 = inlined_call_operand.<no memory space> [shape: f32[1,1], index: 21, kind: input, shape index: {}]   ;;  %s1812_s22 = inlined_call_operand.<no memory space> [shape: f32[1,1], index: 22, kind: input, shape index: {}]  }
   0x1   :  { %1821 = sst [smem:[#allocation21_spill]] %s1786_s0  ;;  %v34_v1 = vstv %s1805_s8  ;;  %v36_v2 = vstv %s1806_s11  ;;  %v38_v3 = vstv %s1807_s12  ;;  %v40_v4 = vstv %s1808_s16 }
   0x2   :  { %1822 = sst [smem:[#allocation22_spill]] %s1787_s1  ;;  %35 = vst [vmem:[#allocation3] sm:$0x1] %v34_v1  ;;  %37 = vst [vmem:[#allocation4] sm:$0x1] %v36_v2  ;;  %v42_v5 = vstv %s1809_s17  ;;  %v44_v6 = vstv %s1810_s20  ;;  %v46_v7 = vstv %s1811_s21  ;;  %v48_v8 = vstv %s1812_s22 }
   0x3   :  { %1823 = sst [smem:[#allocation23_spill]] %s1788_s2  ;;  %39 = vst [vmem:[#allocation5] sm:$0x1] %v38_v3  ;;  %41 = vst [vmem:[#allocation6] sm:$0x1] %v40_v4 }
   0x4   :  { %1824 = sst [smem:[#allocation24_spill]] %s1789_s3  ;;  %43 = vst [vmem:[#allocation7] sm:$0x1] %v42_v5  ;;  %45 = vst [vmem:[#allocation8] sm:$0x1] %v44_v6 }
   0x5   :  { %1825 = sst [smem:[#allocation25_spill]] %s1790_s4  ;;  %47 = vst [vmem:[#allocation9] sm:$0x1] %v46_v7  ;;  %49 = vst [vmem:[#allocation10] sm:$0x1] %v48_v8 }
   0x6   :  { %1826 = sst [smem:[#allocation26_spill]] %s1791_s5 }
   0x7   :  { %1827 = sst [smem:[#allocation27_spill]] %s1792_s6 }
   0x8   :  { %1828 = sst [smem:[#allocation28_spill]] %s1793_s7  ;;  %s1832_s7 = sld [smem:[#allocation25_spill]] }
   0x9   :  { %1829 = sst [smem:[#allocation29_spill]] %s1794_s9 }
   0xa   :  { %1830 = sst [smem:[#allocation30_spill]] %s1795_s10 }
   0xb   :  { %1831 = sst [smem:[#allocation31_spill]] %s1796_s13 }
   0xe   :  { %v32_v0 = vstv %s1832_s7 }
   0xf   :  { %33 = vst [vmem:[#allocation2] sm:$0x1] %v32_v0 }
  0x10   :  { %50 = vsyncpa [#allocation12], 0 }
  0x11   :  { %51 = vsyncpa [#allocation14], 0  ;;  %s1833_s3 = sld [smem:[#allocation29_spill]]  ;;  %s1834_s28 = sld [smem:[#allocation26_spill]]  ;;  %v1370_v11 = vmov 0   ;;  %vm111_vm0 = vcmask 261120  }
  0x12   :  { %1207 = vset.pattern.permute.xlu1 %v1370_v11  ;;  %1206 = vset.pattern.permute.xlu0 %v1370_v11  ;;  %s1835_s29 = sld [smem:[#allocation22_spill]]  ;;  %s1836_s12 = sld [smem:[#allocation23_spill]] }
  0x17   :  { %v312_v9 = vld [vmem:[%s1833_s3] sm:$0xff]  ;;  %v313_v12 = vld [vmem:[%s1833_s3 + $0x8] sm:$0xff]  ;;  %v311_v19 = vld [vmem:[%s1834_s28 + $0x18] sm:$0xff] }
  0x18   :  { %v308_v10 = vld [vmem:[%s1834_s28] sm:$0xff]  ;;  %346 = vperm.xlu1 %1207, %v312_v9   ;;  %v309_v14 = vld [vmem:[%s1834_s28 + $0x8] sm:$0xff]  ;;  %v101_v16 = vld [vmem:[%s1835_s29 + $0x10] sm:$0xff] }
  0x19   :  { %318 = vperm.xlu0 %1206, %v308_v10   ;;  %v99_v13 = vld [vmem:[%s1835_s29] sm:$0xff]  ;;  %v100_v15 = vld [vmem:[%s1835_s29 + $0x8] sm:$0xff]  ;;  %v102_v17 = vld [vmem:[%s1835_s29 + $0x18] sm:$0xff] }
  0x1a   :  { %1214 = vtanh.f32 %v99_v13  ;;  %v107_v18 = vld [vmem:[%s1836_s12] sm:$0xff]  ;;  %v310_v20 = vld [vmem:[%s1834_s28 + $0x10] sm:$0xff]  ;;  %v315_v21 = vld [vmem:[%s1833_s3 + $0x18] sm:$0xff] }
  0x1b   :  { %1216 = vtanh.f32 %v100_v15  ;;  %1088 = vmatprep.mubr.msk.f32.mxu0 %vm111_vm0, %v107_v18  ;;  %v314_v22 = vld [vmem:[%s1833_s3 + $0x10] sm:$0xff] }
  0x1c   :  { %1218 = vtanh.f32 %v101_v16  ;;  %351 = vperm.xlu1 %1207, %v313_v12  }
  0x1d   :  { %323 = vperm.xlu0 %1206, %v309_v14   ;;  %1220 = vtanh.f32 %v102_v17 }
  0x20   :  { %333 = vperm.xlu1 %1207, %v311_v19  }
  0x21   :  { %328 = vperm.xlu0 %1206, %v310_v20  }
  0x24   :  { %v1215_v23 = vpop.eup %1214 }
  0x25   :  { %52 = vsyncpa [#allocation17], 0  ;;  %v1217_v24 = vpop.eup %1216  ;;  %361 = vperm.xlu1 %1207, %v315_v21   ;;  %356 = vperm.xlu0 %1206, %v314_v22   ;;  %s1837_s28 = sld [smem:[#allocation31_spill]]  ;;  %v1371_v31 = vmov 1   ;;  %v108_v32 = vld [vmem:[%s1836_s12 + $0x8] sm:$0xff]  ;;  %v109_v33 = vld [vmem:[%s1836_s12 + $0x10] sm:$0xff]  ;;  %v301_v13 = vlaneseq }
  0x26   :  { %v1219_v25 = vpop.eup %1218  ;;  %v1155_v26 = vpack.c.bf16 %v1217_v24, %v1215_v23  ;;  %v110_v35 = vld [vmem:[%s1836_s12 + $0x18] sm:$0xff]  ;;  %v620_v37 = vld [vmem:[%s1799_s18] sm:$0xff]  ;;  %v622_v38 = vld [vmem:[%s1799_s18 + $0x10] sm:$0xff]  ;;  %s1838_s22 = sld [smem:[#allocation27_spill]]  ;;  %s1839_s29 = sld [smem:[#allocation30_spill]]  ;;  %v1372_v58 = vmov 0.0|0.0  }
  0x27   :  { %v1221_v28 = vpop.eup %1220  ;;  %v621_v41 = vld [vmem:[%s1799_s18 + $0x8] sm:$0xff]  ;;  %v623_v43 = vld [vmem:[%s1799_s18 + $0x18] sm:$0xff]  ;;  %v712_v44 = vld [vmem:[%s1800_s19] sm:$0xff]  ;;  %1163 = vmatprep.subr.bf16.mxu1 %v1372_v58  ;;  %vm1373_vm1 = vmmov 0   ;;  %v1374_v60 = vmov 0.0   ;;  %v302_v18 = vshrl.u32 %v301_v13, 7 }
  0x28   :  { %1156 = vmatprep.subr.bf16.mxu0 %v1155_v26  ;;  %v1159_v29 = vpack.c.bf16 %v1221_v28, %v1219_v25  ;;  %v714_v46 = vld [vmem:[%s1800_s19 + $0x10] sm:$0xff]  ;;  %v502_v48 = vld [vmem:[#allocation4] sm:$0x1]  ;;  %v713_v49 = vld [vmem:[%s1800_s19 + $0x8] sm:$0xff]  ;;  %1102 = vmatprep.mubr.msk.f32.mxu1 %vm1373_vm1, %v1374_v60  ;;  %s1841_s16 = sld [smem:[#allocation24_spill]]  ;;  %s1842_s20 = sld [smem:[#allocation28_spill]] }
  0x29   :  { %1158 = vmatpush3.bf16.msra.mxu0 %v1155_v26  ;;  %1208 = vset.pattern.permute.xlu0 %v1371_v31  ;;  %v587_v50 = vld [vmem:[#allocation5] sm:$0x1]  ;;  %v715_v51 = vld [vmem:[%s1800_s19 + $0x18] sm:$0xff]  ;;  %v922_v52 = vld [vmem:[#allocation6] sm:$0x1]  ;;  %s1840_s19 = sld [smem:[#allocation21_spill]] }
  0x2a   :  { %1160 = vmatprep.subr.bf16.mxu0 %v1159_v29  ;;  %v586_v53 = vld [vmem:[#allocation3] sm:$0x1]  ;;  %v923_v54 = vld [vmem:[#allocation9] sm:$0x1]  ;;  %v838_v55 = vld [vmem:[#allocation8] sm:$0x1] }
  0x2b   :  { %v617_v27 = vld [vmem:[%s1837_s28 + $0x8] sm:$0xff]  ;;  %v616_v30 = vld [vmem:[%s1837_s28] sm:$0xff]  ;;  %v618_v34 = vld [vmem:[%s1837_s28 + $0x10] sm:$0xff]  ;;  %v1656_v22 = vsub.s32 0, %v302_v18  ;;  %v670_v23 = vsub.s32 1, %v302_v18  ;;  %vm305_vm2 = vcmask 57344  }
  0x2c   :  { %631 = vperm.xlu1 %1207, %v617_v27   ;;  %653 = vperm.xlu0 %1208, %v616_v30   ;;  %v619_v36 = vld [vmem:[%s1837_s28 + $0x18] sm:$0xff]  ;;  %v372_v39 = vld [vmem:[%s1838_s22] sm:$0xff]  ;;  %v378_v42 = vld [vmem:[%s1839_s29 + $0x10] sm:$0xff] }
  0x2d   :  { %1162 = vmatpush3.bf16.msra.mxu0 %v1159_v29  ;;  %v376_v40 = vld [vmem:[%s1839_s29] sm:$0xff]  ;;  %v377_v45 = vld [vmem:[%s1839_s29 + $0x8] sm:$0xff]  ;;  %v379_v47 = vld [vmem:[%s1839_s29 + $0x18] sm:$0xff] }
  0x2e   :  { %v945_v56 = vld [vmem:[#allocation7] sm:$0x1]  ;;  %v946_v57 = vld [vmem:[#allocation10] sm:$0x1] }
  0x2f   :  { %v1029_v59 = vld [vmem:[%s1840_s19] ss:$0 sm:$0xff] }
  0x30   :  { %1210 = vset.pattern.permute.xlu1 %v1371_v31  ;;  %1209 = vset.pattern.permute.xlu0 %v1370_v11  ;;  %v615_v25 = vld [vmem:[%s1840_s19] sm:$0x3] }
  0x31   :  { %657 = vperm.xlu1 %1210, %v617_v27   ;;  %1089 = vmatmul.mubr.msk.f32.vlgmr.msra.gmra.mrb[0].mxu0 %vm111_vm0, %v108_v32 }
  0x32   :  { %626 = vperm.xlu0 %1209, %v616_v30   ;;  %1091 = vmatprep.mubr.msk.f32.mxu0 %vm111_vm0, %v109_v33  ;;  %v647_v30 = vrot.slane %v615_v25, %v1656_v22 }
  0x35   :  { %1211 = vset.pattern.permute.xlu1 %v1370_v11  ;;  %1092 = vmatmul.mubr.msk.f32.gmra.mrb[2].mxu0 %vm111_vm0, %v110_v35 }
  0x36   :  { %636 = vperm.xlu1 %1211, %v618_v34   ;;  %641 = vperm.xlu0 %1209, %v619_v36  }
  0x37   :  { %1113 = vmatprep.mubr.msk.f32.mxu0 %vm111_vm0, %v372_v39 }
  0x3a   :  { %1212 = vset.pattern.permute.xlu1 %v1371_v31  ;;  %682 = vperm.xlu0 %1209, %v620_v37   ;;  %v671_v31 = vrot.slane %v615_v25, %v670_v23 }
  0x3b   :  { %661 = vperm.xlu1 %1212, %v618_v34   ;;  %v373_v34 = vld [vmem:[%s1838_s22 + $0x8] sm:$0xff] }
  0x3e   :  { %692 = vperm.xlu0 %1209, %v622_v38  }
  0x3f   :  { %665 = vperm.xlu1 %1212, %v619_v36   ;;  %v374_v36 = vld [vmem:[%s1838_s22 + $0x10] sm:$0xff] }
  0x42   :  { %382 = vperm.xlu0 %1209, %v376_v40   ;;  %v375_v40 = vld [vmem:[%s1838_s22 + $0x18] sm:$0xff] }
  0x43   :  { %1213 = vset.pattern.permute.xlu1 %v1370_v11 }
  0x44   :  { %687 = vperm.xlu1 %1213, %v621_v41  }
  0x46   :  { %392 = vperm.xlu0 %1209, %v378_v42  }
  0x48   :  { %697 = vperm.xlu1 %1213, %v623_v43   ;;  %v708_v43 = vld [vmem:[%s1797_s14] sm:$0xff] }
  0x4a   :  { %718 = vperm.xlu0 %1209, %v712_v44  }
  0x4c   :  { %387 = vperm.xlu1 %1213, %v377_v45  }
  0x4e   :  { %728 = vperm.xlu0 %1209, %v714_v46  }
  0x50   :  { %397 = vperm.xlu1 %1213, %v379_v47  }
  0x52   :  { %505 = vperm.xlu0 %1209, %v502_v48  }
  0x54   :  { %723 = vperm.xlu1 %1213, %v713_v49  }
  0x56   :  { %600 = vperm.xlu0 %1209, %v587_v50  }
  0x58   :  { %733 = vperm.xlu1 %1213, %v715_v51  }
  0x5a   :  { %926 = vperm.xlu0 %1209, %v922_v52  }
  0x5c   :  { %590 = vperm.xlu1 %1213, %v586_v53  }
  0x5e   :  { %936 = vperm.xlu0 %1209, %v923_v54  }
  0x60   :  { %841 = vperm.xlu1 %1213, %v838_v55  }
  0x64   :  { %949 = vperm.xlu1 %1213, %v945_v56  }
  0x68   :  { %959 = vperm.xlu1 %1213, %v946_v57  }
  0x97   :  { %v347_v61 = vpop.permute.xlu1 %346 }
  0x98   :  { %v319_v62 = vpop.permute.xlu0 %318 }
  0x99   :  { %v340_v63 = vmul.f32 %v1029_v59, %v319_v62 }
  0x9b   :  { %v364_v0 = vadd.f32 %v347_v61, %v340_v63  ;;  %v352_v1 = vpop.permute.xlu1 %351 }
  0x9c   :  { %v324_v2 = vpop.permute.xlu0 %323 }
  0x9d   :  { %v341_v3 = vmul.f32 %v1029_v59, %v324_v2  ;;  %1222 = vtanh.f32 %v364_v0  ;;  %v709_v2 = vld [vmem:[%s1797_s14 + $0x8] sm:$0xff] }
  0x9f   :  { %v365_v4 = vadd.f32 %v352_v1, %v341_v3  ;;  %v334_v5 = vpop.permute.xlu1 %333  ;;  %v710_v3 = vld [vmem:[%s1797_s14 + $0x10] sm:$0xff] }
  0xa0   :  { %v329_v6 = vpop.permute.xlu0 %328  ;;  %v343_v7 = vmul.f32 %v1029_v59, %v334_v5 }
  0xa1   :  { %1224 = vtanh.f32 %v365_v4  ;;  %v342_v8 = vmul.f32 %v1029_v59, %v329_v6  ;;  %v711_v4 = vld [vmem:[%s1797_s14 + $0x18] sm:$0xff] }
  0xa4   :  { %v362_v9 = vpop.permute.xlu1 %361  ;;  %v357_v10 = vpop.permute.xlu0 %356 }
  0xa5   :  { %v367_v11 = vadd.f32 %v362_v9, %v343_v7  ;;  %v366_v12 = vadd.f32 %v357_v10, %v342_v8 }
  0xa7   :  { %1226 = vtanh.f32 %v367_v11  ;;  %v1223_v15 = vpop.eup %1222 }
  0xa8   :  { %1228 = vtanh.f32 %v366_v12 }
  0xab   :  { %v632_v14 = vpop.permute.xlu1 %631  ;;  %v654_v16 = vpop.permute.xlu0 %653 }
  0xac   :  { %v1225_v17 = vpop.eup %1224  ;;  %v672_v32 = vmul.f32 %v671_v31, %v654_v16  ;;  %v649_v45 = vmul.f32 %v647_v30, %v632_v14 }
  0xad   :  { %v1169_v19 = vpack.c.bf16 %v1225_v17, %v1223_v15  ;;  %v213_v15 = vld [vmem:[%s1841_s16] sm:$0x1] }
  0xaf   :  { %1170 = vmatprep.subr.bf16.mxu0 %v1169_v19 }
  0xb0   :  { %v658_v20 = vpop.permute.xlu1 %657  ;;  %1172 = vmatpush3.bf16.msra.mxu0 %v1169_v19 }
  0xb1   :  { %v627_v21 = vpop.permute.xlu0 %626  ;;  %v1227_v24 = vpop.eup %1226  ;;  %v673_v41 = vmul.f32 %v671_v31, %v658_v20 }
  0xb2   :  { %v1229_v26 = vpop.eup %1228  ;;  %v648_v33 = vmul.f32 %v647_v30, %v627_v21 }
  0xb3   :  { %v1173_v29 = vpack.c.bf16 %v1227_v24, %v1229_v26  ;;  %v677_v50 = vadd.f32 %v673_v41, %v649_v45 }
  0xb4   :  { %v676_v38 = vadd.f32 %v672_v32, %v648_v33 }
  0xb5   :  { %v637_v27 = vpop.permute.xlu1 %636  ;;  %v642_v28 = vpop.permute.xlu0 %641  ;;  %1174 = vmatprep.subr.bf16.mxu0 %v1173_v29 }
  0xb6   :  { %1176 = vmatpush3.bf16.msra.mxu0 %v1173_v29  ;;  %v650_v44 = vmul.f32 %v647_v30, %v637_v27  ;;  %v651_v52 = vmul.f32 %v647_v30, %v642_v28 }
  0xb9   :  { %v683_v37 = vpop.permute.xlu0 %682  ;;  %1114 = vmatmul.mubr.msk.f32.vlgmr.msra.gmra.mrb[4].mxu0 %vm111_vm0, %v373_v34 }
  0xba   :  { %v662_v35 = vpop.permute.xlu1 %661  ;;  %1116 = vmatprep.mubr.msk.f32.mxu0 %vm111_vm0, %v374_v36  ;;  %v700_v46 = vadd.f32 %v683_v37, %v676_v38 }
  0xbb   :  { %v674_v39 = vmul.f32 %v671_v31, %v662_v35  ;;  %v501_v35 = vld [vmem:[%s1842_s20] sm:$0x1] }
  0xbc   :  { %1230 = vtanh.f32 %v700_v46 }
  0xbd   :  { %1117 = vmatmul.mubr.msk.f32.gmra.mrb[6].mxu0 %vm111_vm0, %v375_v40  ;;  %v678_v47 = vadd.f32 %v674_v39, %v650_v44  ;;  %v693_v48 = vpop.permute.xlu0 %692 }
  0xbe   :  { %v666_v42 = vpop.permute.xlu1 %665  ;;  %1138 = vmatprep.mubr.msk.f32.mxu0 %vm111_vm0, %v708_v43 }
  0xbf   :  { %v675_v49 = vmul.f32 %v671_v31, %v666_v42  ;;  %v702_v54 = vadd.f32 %v693_v48, %v678_v47 }
  0xc1   :  { %v679_v55 = vadd.f32 %v675_v49, %v651_v52  ;;  %v383_v17 = vpop.permute.xlu0 %382 }
  0xc3   :  { %v688_v51 = vpop.permute.xlu1 %687 }
  0xc4   :  { %v701_v53 = vadd.f32 %v688_v51, %v677_v50 }
  0xc5   :  { %v393_v25 = vpop.permute.xlu0 %392 }
  0xc6   :  { %1232 = vtanh.f32 %v701_v53  ;;  %v1231_v59 = vpop.eup %1230  ;;  %v837_v53 = vld [vmem:[%s1798_s15] sm:$0x1]  ;;  %s1375_s15 = smov [#allocation11]  }
  0xc7   :  { %v698_v56 = vpop.permute.xlu1 %697  ;;  %1234 = vtanh.f32 %v702_v54  ;;  %s974_s21 = sshll.u32 %s1375_s15, 4  ;;  %s975_s21 = int_to_ptr.vmem [resolvable:$true] %s974_s21 }
  0xc8   :  { %v703_v57 = vadd.f32 %v698_v56, %v679_v55  ;;  %v288_v56 = vld [vmem:[#allocation2] sm:$0x1]  ;;  %s1276_s19 = scalar_lea.vmem %s975_s21, 16  ;;  %s1280_s9 = scalar_lea.vmem %s975_s21, 32 }
  0xc9   :  { %v719_v37 = vpop.permute.xlu0 %718  ;;  %p1277_p0 = scmp.ne.s32.totalorder %s975_s21, %s1276_s19  ;;  %p1281_p1 = scmp.lt.s32.totalorder %s975_s21, %s975_s21 }
  0xca   :  { %1236 = vtanh.f32 %v703_v57  ;;  %p1282_p2 = scmp.lt.s32.totalorder %s1280_s9, %s1276_s19 }
  0xcb   :  { %v388_v16 = vpop.permute.xlu1 %387 }
  0xcc   :  { %p1283_p3 = por %p1282_p2, %p1281_p1 }
  0xcd   :  { %v729_v44 = vpop.permute.xlu0 %728 }
  0xce   :  { %p1284_p4 = pnand %p1283_p3, %p1277_p0 }
  0xcf   :  { %v398_v23 = vpop.permute.xlu1 %397 }
  0xd0   :  { %v1233_v61 = vpop.eup %1232 }
  0xd1   :  { %v1183_v62 = vpack.c.bf16 %v1233_v61, %v1231_v59  ;;  %v1235_v63 = vpop.eup %1234 }
  0xd3   :  { %1184 = vmatprep.subr.bf16.mxu0 %v1183_v62  ;;  %v724_v36 = vpop.permute.xlu1 %723 }
  0xd4   :  { %v1237_v0 = vpop.eup %1236  ;;  %1186 = vmatpush3.bf16.msra.mxu0 %v1183_v62 }
  0xd5   :  { %v1187_v1 = vpack.c.bf16 %v1237_v0, %v1235_v63  ;;  %v506_v0 = vpop.permute.xlu0 %505 }
  0xd7   :  { %1188 = vmatprep.subr.bf16.mxu0 %v1187_v1  ;;  %v734_v42 = vpop.permute.xlu1 %733 }
  0xd8   :  { %1190 = vmatpush3.bf16.msra.mxu0 %v1187_v1  ;;  %v511_v1 = vrot.slane %v506_v0, %v1656_v22 }
  0xdb   :  { %1139 = vmatmul.mubr.msk.f32.vlgmr.msra.gmra.mrb[8].mxu0 %vm111_vm0, %v709_v2 }
  0xdc   :  { %1141 = vmatprep.mubr.msk.f32.mxu0 %vm111_vm0, %v710_v3 }
  0xdf   :  { %1142 = vmatmul.mubr.msk.f32.gmra.mrb[10].mxu0 %vm111_vm0, %v711_v4 }
 0x104   :  { %v1090_v5 = vpop.f32.mrb[0].mxu0 }
 0x105   :  { %1238 = vtanh.f32 %v1090_v5  ;;  %v190_v6 = vpop.f32.mrb[1].mxu0  ;;  %v591_v5 = vpop.permute.xlu1 %590 }
 0x106   :  { %1240 = vtanh.f32 %v190_v6  ;;  %v601_v6 = vpop.permute.xlu0 %600 }
 0x108   :  { %v1093_v7 = vpop.f32.mrb[2].mxu0 }
 0x109   :  { %1242 = vtanh.f32 %v1093_v7  ;;  %v200_v8 = vpop.f32.mrb[3].mxu0  ;;  %v596_v7 = vrot.slane %v591_v5, %v1656_v22 }
 0x10a   :  { %1244 = vtanh.f32 %v200_v8 }
 0x10f   :  { %v1239_v9 = vpop.eup %1238 }
 0x110   :  { %v1241_v10 = vpop.eup %1240 }
 0x111   :  { %v1164_v11 = vpack.c.bf16 %v1239_v9, %v1241_v10  ;;  %v606_v9 = vrot.slane %v601_v6, %v1656_v22 }
 0x113   :  { %v1243_v12 = vpop.eup %1242  ;;  %1165 = vmatpush3.bf16.msra.mxu1 %v1164_v11 }
 0x114   :  { %v1245_v13 = vpop.eup %1244  ;;  %1166 = vmatprep.subr.bf16.mxu1 %v1372_v58 }
 0x115   :  { %v1167_v14 = vpack.c.bf16 %v1243_v12, %v1245_v13  ;;  %v1714_v12 = vpop.permute.xlu0 %926 }
 0x117   :  { %1168 = vmatpush3.bf16.msra.mxu1 %v1167_v14 }
 0x118   :  { %1177 = vmatprep.subr.bf16.mxu1 %v1372_v58 }
 0x119   :  { %v1716_v14 = vpop.permute.xlu0 %936 }
 0x11a   :  { %1103 = vmatmul.mubr.msk.f32.vlgmr.msra.gmra.mrb[0].mxu1 %vm111_vm0, %v213_v15  ;;  %v842_v15 = vpop.permute.xlu1 %841 }
 0x11b   :  { %1127 = vmatprep.mubr.msk.f32.mxu1 %vm1373_vm1, %v1374_v60 }
 0x18c   :  { %v1115_v18 = vpop.f32.mrb[4].mxu0 }
 0x18d   :  { %v484_v19 = vadd.f32 %v1115_v18, %v388_v16  ;;  %v478_v20 = vpop.f32.mrb[5].mxu0 }
 0x18e   :  { %v479_v21 = vadd.f32 %v478_v20, %v383_v17 }
 0x18f   :  { %1246 = vtanh.f32 %v484_v19  ;;  %v847_v19 = vrot.slane %v842_v15, %v1656_v22 }
 0x190   :  { %1248 = vtanh.f32 %v479_v21  ;;  %v1118_v24 = vpop.f32.mrb[6].mxu0 }
 0x191   :  { %v494_v26 = vadd.f32 %v1118_v24, %v398_v23  ;;  %v488_v27 = vpop.f32.mrb[7].mxu0 }
 0x192   :  { %v489_v28 = vadd.f32 %v488_v27, %v393_v25 }
 0x193   :  { %1250 = vtanh.f32 %v494_v26 }
 0x194   :  { %1252 = vtanh.f32 %v489_v28 }
 0x199   :  { %v1247_v29 = vpop.eup %1246 }
 0x19a   :  { %v1249_v30 = vpop.eup %1248 }
 0x19b   :  { %v1178_v31 = vpack.c.bf16 %v1247_v29, %v1249_v30 }
 0x19d   :  { %v1251_v32 = vpop.eup %1250  ;;  %1179 = vmatpush3.bf16.msra.mxu1 %v1178_v31 }
 0x19e   :  { %v1253_v33 = vpop.eup %1252  ;;  %1180 = vmatprep.subr.bf16.mxu1 %v1372_v58 }
 0x19f   :  { %v1181_v34 = vpack.c.bf16 %v1251_v32, %v1253_v33 }
 0x1a1   :  { %1182 = vmatpush3.bf16.msra.mxu1 %v1181_v34 }
 0x1a2   :  { %1191 = vmatprep.subr.bf16.mxu1 %v1372_v58 }
 0x1a4   :  { %1128 = vmatmul.mubr.msk.f32.vlgmr.msra.gmra.mrb[2].mxu1 %vm111_vm0, %v501_v35 }
 0x1a5   :  { %1152 = vmatprep.mubr.msk.f32.mxu1 %vm1373_vm1, %v1374_v60 }
 0x1ae   :  { %v1140_v38 = vpop.f32.mrb[8].mxu0 }
 0x1af   :  { %v820_v39 = vadd.f32 %v1140_v38, %v724_v36  ;;  %v814_v40 = vpop.f32.mrb[9].mxu0 }
 0x1b0   :  { %v815_v41 = vadd.f32 %v814_v40, %v719_v37 }
 0x1b1   :  { %1254 = vtanh.f32 %v820_v39 }
 0x1b2   :  { %1256 = vtanh.f32 %v815_v41  ;;  %v1143_v43 = vpop.f32.mrb[10].mxu0 }
 0x1b3   :  { %v830_v45 = vadd.f32 %v1143_v43, %v734_v42  ;;  %v824_v46 = vpop.f32.mrb[11].mxu0 }
 0x1b4   :  { %v825_v47 = vadd.f32 %v824_v46, %v729_v44 }
 0x1b5   :  { %1258 = vtanh.f32 %v830_v45 }
 0x1b6   :  { %1260 = vtanh.f32 %v825_v47 }
 0x1bb   :  { %v1255_v48 = vpop.eup %1254 }
 0x1bc   :  { %v1257_v49 = vpop.eup %1256 }
 0x1bd   :  { %v1192_v50 = vpack.c.bf16 %v1255_v48, %v1257_v49 }
 0x1bf   :  { %v1259_v60 = vpop.eup %1258  ;;  %1193 = vmatpush3.bf16.msra.mxu1 %v1192_v50 }
 0x1c0   :  { %v1261_v51 = vpop.eup %1260  ;;  %1194 = vmatprep.subr.bf16.mxu1 %v1372_v58 }
 0x1c1   :  { %v1195_v52 = vpack.c.bf16 %v1259_v60, %v1261_v51 }
 0x1c3   :  { %1196 = vmatpush3.bf16.msra.mxu1 %v1195_v52 }
 0x1c6   :  { %1153 = vmatmul.mubr.msk.f32.vlgmr.msra.gmra.mrb[4].mxu1 %vm111_vm0, %v837_v53 }
 0x1ed   :  { %v283_v54 = vpop.f32.mrb[0].mxu1 }
 0x1ee   :  { %1262 = vtanh.f32 %v283_v54  ;;  %v1104_v55 = vpop.f32.mrb[1].mxu1 }
 0x1f8   :  { %v1263_v57 = vpop.eup %1262 }
 0x1f9   :  { %v289_v59 = vmul.f32 %v1263_v57, %v288_v56 }
 0x1fb   :  { %v1028_v61 = vmul.f32 -1.442695, %v289_v59 }
 0x1fd   :  { %1264 = vpow2.f32 %v1028_v61 }
 0x207   :  { %v1265_v62 = vpop.eup %1264 }
 0x208   :  { %v293_v63 = vadd.f32 1.0, %v1265_v62 }
 0x20a   :  { %1266 = vrcp.f32 %v293_v63 }
 0x214   :  { %v1267_v58 = vpop.eup %1266 }
 0x215   :  { %298 = vperm.xlu0 %1209, %v1267_v58  }
 0x277   :  { %v581_v2 = vpop.f32.mrb[2].mxu1 }
 0x278   :  { %v582_v3 = vadd.f32 %v581_v2, %v511_v1  ;;  %v1129_v4 = vpop.f32.mrb[3].mxu1 }
 0x27a   :  { %1268 = vtanh.f32 %v582_v3 }
 0x284   :  { %v1269_v8 = vpop.eup %1268 }
 0x285   :  { %v597_v10 = vmul.f32 %v1269_v8, %v596_v7 }
 0x287   :  { %v607_v11 = vadd.f32 %v606_v9, %v597_v10 }
 0x289   :  { %v1035_v13 = vmul.f32 -1.442695, %v607_v11 }
 0x28b   :  { %1270 = vpow2.f32 %v1035_v13 }
 0x294   :  { %v299_v16 = vpop.permute.xlu0 %298 }
 0x295   :  { %v304_v17 = vrot.slane %v299_v16, %v1656_v22  ;;  %v1271_v18 = vpop.eup %1270 }
 0x296   :  { %v611_v21 = vadd.f32 1.0, %v1271_v18 }
 0x297   :  { %306 = vst.msk [vmem:[#allocation11] sm:$0x1] %vm305_vm2, %v304_v17 }
 0x299   :  { %v917_v20 = vpop.f32.mrb[4].mxu1 }
 0x29a   :  { %v918_v23 = vadd.f32 %v917_v20, %v847_v19  ;;  %v1154_v24 = vpop.f32.mrb[5].mxu1 }
 0x29b   :  { %1287 = shalt.err (!%p1284_p4)
}
 0x29c   :  { %s1288_s28 = scalar_lea.hbm %s1801_s23, 16 }
 0x29d   :  { %p1289_p5 = scmp.ne.s32.totalorder %s1801_s23, %s1288_s28  ;;  %p1292_p6 = scmp.lt.u32.totalorder %s1288_s28, %s1801_s23 }
 0x29f   :  { %p1294_p7 = pnand %p1292_p6, %p1289_p5 }
 0x2a1   :  { %1297 = shalt.err (!%p1294_p7)
}
 0x2a2   :  { %977 = dma.vmem_to_hbm [thread:$0]  %s975_s21, 16, %s1801_s23, [#allocation12]   ;;  %1272 = vrcp.f32 %v611_v21  ;;  %v950_v25 = vpop.permute.xlu1 %949  ;;  %v932_v28 = vrot.slane %v1714_v12, %v1656_v22  ;;  %v942_v31 = vrot.slane %v1716_v14, %v1656_v22 }
 0x2a3   :  { %1274 = vtanh.f32 %v918_v23  ;;  %s1376_s22 = smov [#allocation13]   ;;  %v955_v29 = vrot.slane %v950_v25, %v1656_v22  ;;  %s1377_s8 = smov [#allocation15]  }
 0x2a4   :  { %s984_s13 = sshll.u32 %s1376_s22, 4  ;;  %s994_s6 = sshll.u32 %s1377_s8, 4  ;;  %s985_s13 = int_to_ptr.vmem [resolvable:$true] %s984_s13  ;;  %s995_s6 = int_to_ptr.vmem [resolvable:$true] %s994_s6 }
 0x2a5   :  { %s1378_s11 = smov [#allocation16]   ;;  %s1298_s1 = scalar_lea.vmem %s985_s13, 16 }
 0x2a6   :  { %v960_v26 = vpop.permute.xlu1 %959  ;;  %s1004_s23 = sshll.u32 %s1378_s11, 4  ;;  %p1299_p8 = scmp.ne.s32.totalorder %s985_s13, %s1298_s1  ;;  %s1752_s23 = int_to_ptr.vmem [resolvable:$true] %s1004_s23 }
 0x2a7   :  { %v965_v32 = vrot.slane %v960_v26, %v1656_v22  ;;  %s1302_s14 = scalar_lea.vmem %s985_s13, 32  ;;  %p1303_p9 = scmp.lt.s32.totalorder %s985_s13, %s985_s13 }
 0x2a8   :  { %p1304_p10 = scmp.lt.s32.totalorder %s1302_s14, %s1298_s1 }
 0x2aa   :  { %p1305_p11 = por %p1304_p10, %p1303_p9 }
 0x2ac   :  { %v1273_v27 = vpop.eup %1272  ;;  %p1306_p12 = pnand %p1305_p11, %p1299_p8 }
 0x2ad   :  { %v1275_v30 = vpop.eup %1274  ;;  %614 = vst.msk [vmem:[#allocation13] sm:$0x1] %vm305_vm2, %v1273_v27 }
 0x2ae   :  { %1309 = shalt.err (!%p1306_p12)
}
 0x2af   :  { %s1310_s18 = scalar_lea.hbm %s1802_s24, 16 }
 0x2b0   :  { %p1311_p13 = scmp.ne.s32.totalorder %s1802_s24, %s1310_s18  ;;  %p1314_p0 = scmp.lt.u32.totalorder %s1310_s18, %s1802_s24 }
 0x2b2   :  { %p1316_p1 = pnand %p1314_p0, %p1311_p13 }
 0x2b4   :  { %1319 = shalt.err (!%p1316_p1)
}
 0x2b5   :  { %987 = dma.vmem_to_hbm [thread:$0]  %s985_s13, 16, %s1802_s24, [#allocation14]   ;;  %v933_v22 = vmul.f32 %v1275_v30, %v932_v28  ;;  %v956_v33 = vmul.f32 %v1275_v30, %v955_v29 }
 0x2b6   :  { %s1320_s19 = scalar_lea.vmem %s995_s6, 16  ;;  %s1324_s9 = scalar_lea.vmem %s995_s6, 32 }
 0x2b7   :  { %v943_v34 = vadd.f32 %v942_v31, %v933_v22  ;;  %v966_v35 = vadd.f32 %v965_v32, %v956_v33  ;;  %p1321_p2 = scmp.ne.s32.totalorder %s995_s6, %s1320_s19  ;;  %p1325_p3 = scmp.lt.s32.totalorder %s995_s6, %s995_s6 }
 0x2b8   :  { %p1326_p4 = scmp.lt.s32.totalorder %s1324_s9, %s1320_s19 }
 0x2b9   :  { %944 = vst.msk [vmem:[#allocation15] sm:$0x1] %vm305_vm2, %v943_v34  ;;  %967 = vst.msk [vmem:[#allocation16] sm:$0x1] %vm305_vm2, %v966_v35 }
 0x2ba   :  { %p1327_p5 = por %p1326_p4, %p1325_p3 }
 0x2bc   :  { %p1328_p6 = pnand %p1327_p5, %p1321_p2 }
 0x2be   :  { %1331 = shalt.err (!%p1328_p6)
}
 0x2bf   :  { %s1332_s29 = scalar_lea.hbm %s1803_s25, 16 }
 0x2c0   :  { %p1333_p7 = scmp.ne.s32.totalorder %s1803_s25, %s1332_s29  ;;  %p1336_p8 = scmp.lt.u32.totalorder %s1332_s29, %s1803_s25 }
 0x2c2   :  { %p1338_p9 = pnand %p1336_p8, %p1333_p7 }
 0x2c4   :  { %1341 = shalt.err (!%p1338_p9)
}
 0x2c5   :  { %997 = dma.vmem_to_hbm [thread:$0]  %s995_s6, 16, %s1803_s25, [#allocation14]  }
 0x2c6   :  { %s1342_s5 = scalar_lea.vmem %s1752_s23, 16  ;;  %s1346_s22 = scalar_lea.vmem %s1752_s23, 32 }
 0x2c7   :  { %p1343_p10 = scmp.ne.s32.totalorder %s1752_s23, %s1342_s5  ;;  %p1347_p11 = scmp.lt.s32.totalorder %s1752_s23, %s1752_s23 }
 0x2c8   :  { %p1348_p12 = scmp.lt.s32.totalorder %s1346_s22, %s1342_s5 }
 0x2ca   :  { %p1349_p13 = por %p1348_p12, %p1347_p11 }
 0x2cc   :  { %p1350_p0 = pnand %p1349_p13, %p1343_p10 }
 0x2ce   :  { %1353 = shalt.err (!%p1350_p0)
}
 0x2cf   :  { %s1354_s11 = scalar_lea.hbm %s1804_s26, 16 }
 0x2d0   :  { %p1355_p1 = scmp.ne.s32.totalorder %s1804_s26, %s1354_s11  ;;  %p1358_p2 = scmp.lt.u32.totalorder %s1354_s11, %s1804_s26 }
 0x2d2   :  { %p1360_p3 = pnand %p1358_p2, %p1355_p1 }
 0x2d4   :  { %1363 = shalt.err (!%p1360_p3)
}
 0x2d5   :  { %1007 = dma.vmem_to_hbm [thread:$0]  %s1752_s23, 16, %s1804_s26, [#allocation17]  }
 0x2d6   :  { %1364 = dma.done.wait [#allocation12], 16  }
 0x2d7   :  { %1365 = vsyncadd [#allocation12], 4294967280 }
 0x2d8   :  { %1366 = dma.done.wait [#allocation14], 32  }
 0x2d9   :  { %1367 = vsyncadd [#allocation14], 4294967264 }
 0x2da   :  { %1368 = dma.done.wait [#allocation17], 16  }
 0x2db   :  { %1369 = vsyncadd [#allocation17], 4294967280 }
 0x2dc   :  { %1020 = vsyncpa [#allocation12], 1 }
 0x2dd   :  { %1021 = vsyncpa [#allocation14], 1 }
 0x2de   :  { %1022 = vsyncpa [#allocation17], 1 }

</bundles_post_ra>
